<compile_context>
chip_gen: v6e
topology: v6e:2x2x1
jax: 0.10.0
libtpu: 0.0.40
codegen_flags: <defaults>
</compile_context>

<pallas_src>
import functools

import jax
import jax.numpy as jnp
from jax.experimental import pallas as pl
from jax.experimental.pallas import tpu as pltpu


# --------------------------------------------------------------------------
# Fused kernel: all S steps (groundtruth quantization + generator MLP + xt
# carry) for one (batch, pixel-tile) grid point.
# --------------------------------------------------------------------------
def _fused_kernel(src_img_ref, tgt_img_ref, maps_ref, noise_ref,
                  w1m_ref, w1g_ref, w1x_ref, b1_ref, emb_ref, w2_ref, b2_ref,
                  gt_src_ref, gt_tgt_ref, fake_ref,
                  *, step_size):
    src_img = src_img_ref[0]          # (3, tm)
    tgt_img = tgt_img_ref[0]          # (3, tm)
    maps = maps_ref[0]                # (2*cm, tm)   [src_map ; tgt_map]
    xt = noise_ref[0]                 # (3, tm)      initial x_t (randn analogue)

    # Layer-1 contribution of the (step-invariant) pose maps: one MXU dot,
    # hoisted out of the step loop.
    h_static = jnp.dot(w1m_ref[...], maps, preferred_element_type=jnp.float32)

    w1g = w1g_ref[...]
    w1x = w1x_ref[...]
    b1 = b1_ref[...]
    emb = emb_ref[...]
    w2 = w2_ref[...]
    b2 = b2_ref[...]

    dstep = 255 // step_size          # static python int

    def quant(img, dt):               # get_groundtruth (dt is a static float)
        denorm = (img + 1.0) * 127.5
        q = jnp.floor(denorm / dt) * dt      # exact divide: matches torch '//'
        return q * (2.0 / 255.0) - 1.0

    # Step loop folded into the kernel body: S is small & static -> unrolled
    # at trace time, xt carry stays in vregs, one grid step per image tile.
    for s in range(step_size):
        step = s + 1
        if step == step_size:                 # last step: identity (trace time)
            gt_src, gt_tgt = src_img, tgt_img
        else:
            dt = float(255 - dstep * step)
            gt_src = quant(src_img, dt)
            gt_tgt = quant(tgt_img, dt)
        gt_src_ref[s, 0] = gt_src
        gt_tgt_ref[s, 0] = gt_tgt

        # synthetic pointwise generator (the 14-channel concat is never
        # materialized): static part + two tiny K=3 dots per step
        h = h_static
        h = h + jnp.dot(w1g, gt_src, preferred_element_type=jnp.float32)
        h = h + jnp.dot(w1x, xt, preferred_element_type=jnp.float32)
        h = jnp.maximum(h + b1 + float(step) * emb, 0.0)       # VPU relu
        y = jnp.dot(w2, h, preferred_element_type=jnp.float32) + b2
        out = jnp.tanh(y)                                       # (6, tm), EUP

        fake_ref[s, 0] = out                                    # lane-dense
        xt = out[:3, :]                                         # carry new x_t


def _pick_tile(hw_pad, bytes_per_col, batch, budget_bytes, max_tile=32768):
    """Largest tm (multiple of 128, dividing hw_pad, within VMEM budget);
    prefer configurations with >= 2 parallel blocks (v7x megacore)."""
    cand = [t for t in range(128, min(max_tile, hw_pad) + 1, 128)
            if hw_pad % t == 0 and t * bytes_per_col <= budget_bytes]
    if not cand:
        cand = [128]
    best = cand[-1]
    if batch * (hw_pad // best) < 2:
        split = [t for t in cand if (hw_pad // t) >= 2]
        if split:
            best = split[-1]
    return best


# --------------------------------------------------------------------------
# DPTNModel wrapper (inference mode)
# --------------------------------------------------------------------------
class DPTNModelPallas:
    def __init__(self, step_size=3, map_channels=4, hidden=32, seed=1):
        self.step_size = step_size
        self.map_channels = map_channels
        self.hidden = hidden
        k = jax.random.PRNGKey(seed)
        k1, k2, k3, k4, k5, k6, k7 = jax.random.split(k, 7)
        cm = map_channels
        # weights stored channel-major (C_out, C_in); the map weight is the
        # pre-merged [w1_src_map | w1_tgt_map] block.
        self.params = dict(
            w1m=jax.random.normal(k1, (hidden, 2 * cm), jnp.float32) * 0.2,
            w1g=jax.random.normal(k2, (hidden, 3), jnp.float32) * 0.2,
            w1x=jax.random.normal(k3, (hidden, 3), jnp.float32) * 0.2,
            b1=jax.random.normal(k4, (hidden, 1), jnp.float32) * 0.05,
            emb=jax.random.normal(k5, (hidden, 1), jnp.float32) * 0.05,
            w2=jax.random.normal(k6, (6, hidden), jnp.float32) * 0.2,
            b2=jax.random.normal(k7, (6, 1), jnp.float32) * 0.05,
        )

    # ---- fused generate loop ----------------------------------------------
    def _run_fused(self, src_image, src_map, tgt_image, tgt_map, noise):
        """All inputs NCHW; returns (gt_src, gt_tgt, fake) channel-major,
        shapes (S, B, 3, HW), (S, B, 3, HW), (S, B, 6, HW)."""
        B, _, H, W = src_image.shape
        HW = H * W
        S = self.step_size
        cm = self.map_channels
        hd = self.hidden
        p = self.params

        HW_pad = ((HW + 127) // 128) * 128      # keep stores lane-dense

        def flat(x):
            x = x.reshape(B, x.shape[1], HW)
            if HW_pad != HW:
                x = jnp.pad(x, ((0, 0), (0, 0), (0, HW_pad - HW)))
            return x

        src_img_f = flat(src_image)
        tgt_img_f = flat(tgt_image)
        maps_f = flat(jnp.concatenate([src_map, tgt_map], axis=1))
        noise_f = flat(noise)

        # VMEM working set per pixel column (f32, double-buffered blocks).
        rows_in = 3 + 3 + 2 * cm + 3
        rows_out = 12 * S
        bytes_per_col = (rows_in + rows_out) * 4 * 2
        budget = 20 * 1024 * 1024               # working-set target
        tm = _pick_tile(HW_pad, bytes_per_col, B, budget)
        n_tiles = HW_pad // tm

        img_spec = pl.BlockSpec((1, 3, tm), lambda b, i: (b, 0, i))
        map_spec = pl.BlockSpec((1, 2 * cm, tm), lambda b, i: (b, 0, i))
        full = lambda shape: pl.BlockSpec(shape, lambda b, i: (0, 0))
        out3_spec = pl.BlockSpec((S, 1, 3, tm), lambda b, i: (0, b, 0, i))
        out6_spec = pl.BlockSpec((S, 1, 6, tm), lambda b, i: (0, b, 0, i))

        gt_src_o, gt_tgt_o, fake_o = pl.pallas_call(
            functools.partial(_fused_kernel, step_size=S),
            out_shape=(
                jax.ShapeDtypeStruct((S, B, 3, HW_pad), jnp.float32),
                jax.ShapeDtypeStruct((S, B, 3, HW_pad), jnp.float32),
                jax.ShapeDtypeStruct((S, B, 6, HW_pad), jnp.float32),
            ),
            grid=(B, n_tiles),
            in_specs=[
                img_spec,              # src_image
                img_spec,              # tgt_image
                map_spec,              # [src_map ; tgt_map]
                img_spec,              # noise (initial xt)
                full((hd, 2 * cm)),    # w1m
                full((hd, 3)),         # w1g
                full((hd, 3)),         # w1x
                full((hd, 1)),         # b1
                full((hd, 1)),         # step embedding
                full((6, hd)),         # w2
                full((6, 1)),          # b2
            ],
            out_specs=(out3_spec, out3_spec, out6_spec),
            compiler_params=pltpu.CompilerParams(
                dimension_semantics=("parallel", "parallel"),
                vmem_limit_bytes=32 * 1024 * 1024),
        )(src_img_f, tgt_img_f, maps_f, noise_f,
          p["w1m"], p["w1g"], p["w1x"], p["b1"], p["emb"], p["w2"], p["b2"])

        if HW_pad != HW:
            gt_src_o = gt_src_o[..., :HW]
            gt_tgt_o = gt_tgt_o[..., :HW]
            fake_o = fake_o[..., :HW]
        return gt_src_o, gt_tgt_o, fake_o

    # ---- public API mirroring DPTNModel ------------------------------------
    def get_vis(self, true_list_nchw, fake_list_nchw):
        gt_vis = jnp.concatenate(true_list_nchw, axis=-1)     # along W
        fake_vis = jnp.concatenate(fake_list_nchw, axis=-1)   # along W
        return jnp.concatenate([gt_vis, fake_vis], axis=-2)   # along H

    def generate_fake(self, src_image, src_map, tgt_image, tgt_map, rng):
        """Inputs NCHW. Mirrors DPTNModel.generate_fake (eval path)."""
        b, c, h, w = src_image.shape
        xt0 = jax.random.normal(rng, (b, 3, h, w), jnp.float32)  # torch.randn

        gt_src_o, gt_tgt_o, fake_o = self._run_fused(
            src_image, src_map, tgt_image, tgt_map, xt0)

        S = self.step_size
        gt_srcs = [gt_src_o[s].reshape(b, 3, h, w) for s in range(S)]
        gt_tgts = [gt_tgt_o[s].reshape(b, 3, h, w) for s in range(S)]
        fake_tgts = [fake_o[s, :, :3].reshape(b, 3, h, w) for s in range(S)]
        fake_srcs = [fake_o[s, :, 3:].reshape(b, 3, h, w) for s in range(S)]

        vis_tgt = self.get_vis(gt_tgts, fake_tgts)
        vis_src = self.get_vis(gt_srcs, fake_srcs)
        return (gt_tgts, gt_srcs), (fake_tgts, fake_srcs), (vis_tgt, vis_src)

    def forward(self, data, mode, rng):
        if mode != "inference":
            # TODO(synk): 'generator'/'discriminator' modes require external
            # netD + VGG/GAN/NLL/perceptual losses; only inference is implemented.
            raise NotImplementedError(mode)
        src_image, src_map = data["src_image"], data["src_map"]
        tgt_image, tgt_map = data["tgt_image"], data["tgt_map"]
        (_, _), (fake_tgts, fake_srcs), (vis_tgt, vis_src) = self.generate_fake(
            src_image, src_map, tgt_image, tgt_map, rng)
        return (fake_tgts, fake_srcs), (vis_tgt, vis_src)


# --------------------------------------------------------------------------
# Pure-JAX reference (same math as the kernel) for correctness checking.
# --------------------------------------------------------------------------
def _reference_generate(model, src_image, src_map, tgt_image, tgt_map, rng):
    S = model.step_size
    cm = model.map_channels
    p = model.params
    B, _, H, W = src_image.shape
    HW = H * W
    hi = jax.lax.Precision.HIGHEST

    maps = jnp.concatenate([src_map, tgt_map], axis=1).reshape(B, 2 * cm, HW)
    src = src_image.reshape(B, 3, HW)
    tgt = tgt_image.reshape(B, 3, HW)
    xt = jax.random.normal(rng, (B, 3, H, W), jnp.float32).reshape(B, 3, HW)

    def quant(img, step):
        if step == S:
            return img
        dt = float(255 - (255 // S) * step)
        denorm = (img + 1.0) * 127.5
        return jnp.floor(denorm / dt) * dt * (2.0 / 255.0) - 1.0

    h_static = jnp.einsum('oc,bcp->bop', p["w1m"], maps, precision=hi)
    gt_srcs, gt_tgts, fake_tgts, fake_srcs = [], [], [], []
    for s in range(S):
        step = s + 1
        gs = quant(src, step)
        gt = quant(tgt, step)
        h = (h_static
             + jnp.einsum('oc,bcp->bop', p["w1g"], gs, precision=hi)
             + jnp.einsum('oc,bcp->bop', p["w1x"], xt, precision=hi))
        h = jnp.maximum(h + p["b1"] + float(step) * p["emb"], 0.0)
        y = jnp.einsum('oc,bcp->bop', p["w2"], h, precision=hi) + p["b2"]
        out = jnp.tanh(y)
        gt_srcs.append(gs.reshape(B, 3, H, W))
        gt_tgts.append(gt.reshape(B, 3, H, W))
        fake_tgts.append(out[:, :3].reshape(B, 3, H, W))
        fake_srcs.append(out[:, 3:].reshape(B, 3, H, W))
        xt = out[:, :3]
    return gt_tgts, gt_srcs, fake_tgts, fake_srcs


# --------------------------------------------------------------------------
if __name__ == "__main__":
    B, C_IMG, C_MAP, H, W = 2, 3, 4, 16, 16
    STEP_SIZE = 3

    key = jax.random.PRNGKey(0)
    k_si, k_ti, k_sm, k_tm, k_noise = jax.random.split(key, 5)
    data = {
        # images in [-1, 1] like normalized RGB
        "src_image": jnp.tanh(jax.random.normal(k_si, (B, C_IMG, H, W), jnp.float32)),
        "tgt_image": jnp.tanh(jax.random.normal(k_ti, (B, C_IMG, H, W), jnp.float32)),
        "src_map": jax.random.normal(k_sm, (B, C_MAP, H, W), jnp.float32),
        "tgt_map": jax.random.normal(k_tm, (B, C_MAP, H, W), jnp.float32),
    }

    model = DPTNModelPallas(step_size=STEP_SIZE, map_channels=C_MAP, hidden=32)
    (gt_tgts, gt_srcs), (fake_tgts, fake_srcs), (vis_tgt, vis_src) = model.generate_fake(
        data["src_image"], data["src_map"], data["tgt_image"], data["tgt_map"], k_noise)

    jax.block_until_ready(fake_tgts[-1])
    jax.block_until_ready(fake_srcs[-1])
    jax.block_until_ready(vis_tgt)
    jax.block_until_ready(vis_src)

    # shape / sanity checks
    assert len(fake_tgts) == STEP_SIZE and len(fake_srcs) == STEP_SIZE
    assert fake_tgts[0].shape == (B, 3, H, W)
    assert fake_srcs[0].shape == (B, 3, H, W)
    assert vis_tgt.shape == (B, 3, 2 * H, STEP_SIZE * W)
    assert vis_src.shape == (B, 3, 2 * H, STEP_SIZE * W)
    assert bool(jnp.all(jnp.isfinite(vis_tgt))) and bool(jnp.all(jnp.isfinite(vis_src)))

    # correctness vs. pure-JAX reference
    r_gt_tgts, r_gt_srcs, r_fake_tgts, r_fake_srcs = _reference_generate(
        model, data["src_image"], data["src_map"],
        data["tgt_image"], data["tgt_map"], k_noise)
    for s in range(STEP_SIZE):
        assert bool(jnp.allclose(gt_srcs[s], r_gt_srcs[s], atol=2e-3, rtol=2e-3))
        assert bool(jnp.allclose(gt_tgts[s], r_gt_tgts[s], atol=2e-3, rtol=2e-3))
        assert bool(jnp.allclose(fake_tgts[s], r_fake_tgts[s], atol=2e-3, rtol=2e-3))
        assert bool(jnp.allclose(fake_srcs[s], r_fake_srcs[s], atol=2e-3, rtol=2e-3))

    # also exercise the public forward() path
    (ft2, fs2), (vt2, vs2) = model.forward(data, mode="inference", rng=k_noise)
    jax.block_until_ready(vt2)

    print("KERNEL_OK")
</pallas_src>

<mosaic_0001>
module attributes {stable_mosaic.version = 11 : i64} {
  func.func @_fused_kernel(%arg0: i32, %arg1: i32, %arg2: memref<1x3x256xf32, #tpu.memory_space<vmem>>, %arg3: memref<1x3x256xf32, #tpu.memory_space<vmem>>, %arg4: memref<1x8x256xf32, #tpu.memory_space<vmem>>, %arg5: memref<1x3x256xf32, #tpu.memory_space<vmem>>, %arg6: memref<32x8xf32, #tpu.memory_space<vmem>>, %arg7: memref<32x3xf32, #tpu.memory_space<vmem>>, %arg8: memref<32x3xf32, #tpu.memory_space<vmem>>, %arg9: memref<32x1xf32, #tpu.memory_space<vmem>>, %arg10: memref<32x1xf32, #tpu.memory_space<vmem>>, %arg11: memref<6x32xf32, #tpu.memory_space<vmem>>, %arg12: memref<6x1xf32, #tpu.memory_space<vmem>>, %arg13: memref<3x1x3x256xf32, #tpu.memory_space<vmem>>, %arg14: memref<3x1x3x256xf32, #tpu.memory_space<vmem>>, %arg15: memref<3x1x6x256xf32, #tpu.memory_space<vmem>>) attributes {dimension_semantics = [#tpu.dimension_semantics<parallel>, #tpu.dimension_semantics<parallel>], iteration_bounds = array<i64: 2, 1>, scalar_prefetch = 0 : i64, scratch_operands = 0 : i64, tpu.core_type = #tpu.core_type<tc>, window_params = [{transform_indices = @transform_0, window_bounds = array<i64: 1, 3, 256>}, {transform_indices = @transform_1, window_bounds = array<i64: 1, 3, 256>}, {transform_indices = @transform_2, window_bounds = array<i64: 1, 8, 256>}, {transform_indices = @transform_3, window_bounds = array<i64: 1, 3, 256>}, {pipeline_mode = #tpu.pipeline_mode<synchronous>, transform_indices = @transform_4, window_bounds = array<i64: 32, 8>}, {pipeline_mode = #tpu.pipeline_mode<synchronous>, transform_indices = @transform_5, window_bounds = array<i64: 32, 3>}, {pipeline_mode = #tpu.pipeline_mode<synchronous>, transform_indices = @transform_6, window_bounds = array<i64: 32, 3>}, {pipeline_mode = #tpu.pipeline_mode<synchronous>, transform_indices = @transform_7, window_bounds = array<i64: 32, 1>}, {pipeline_mode = #tpu.pipeline_mode<synchronous>, transform_indices = @transform_8, window_bounds = array<i64: 32, 1>}, {pipeline_mode = #tpu.pipeline_mode<synchronous>, transform_indices = @transform_9, window_bounds = array<i64: 6, 32>}, {pipeline_mode = #tpu.pipeline_mode<synchronous>, transform_indices = @transform_10, window_bounds = array<i64: 6, 1>}, {transform_indices = @transform_11, window_bounds = array<i64: 3, 1, 3, 256>}, {transform_indices = @transform_12, window_bounds = array<i64: 3, 1, 3, 256>}, {transform_indices = @transform_13, window_bounds = array<i64: 3, 1, 6, 256>}]} {
    %c0 = arith.constant 0 : index
    %c0_0 = arith.constant 0 : index
    %c0_1 = arith.constant 0 : index
    %0 = vector.load %arg2[%c0, %c0_0, %c0_1] : memref<1x3x256xf32, #tpu.memory_space<vmem>>, vector<1x3x256xf32>
    %1 = vector.shape_cast %0 : vector<1x3x256xf32> to vector<3x256xf32>
    %c0_2 = arith.constant 0 : index
    %c0_3 = arith.constant 0 : index
    %c0_4 = arith.constant 0 : index
    %2 = vector.load %arg3[%c0_2, %c0_3, %c0_4] : memref<1x3x256xf32, #tpu.memory_space<vmem>>, vector<1x3x256xf32>
    %3 = vector.shape_cast %2 : vector<1x3x256xf32> to vector<3x256xf32>
    %c0_5 = arith.constant 0 : index
    %c0_6 = arith.constant 0 : index
    %c0_7 = arith.constant 0 : index
    %4 = vector.load %arg4[%c0_5, %c0_6, %c0_7] : memref<1x8x256xf32, #tpu.memory_space<vmem>>, vector<1x8x256xf32>
    %5 = vector.shape_cast %4 : vector<1x8x256xf32> to vector<8x256xf32>
    %c0_8 = arith.constant 0 : index
    %c0_9 = arith.constant 0 : index
    %c0_10 = arith.constant 0 : index
    %6 = vector.load %arg5[%c0_8, %c0_9, %c0_10] : memref<1x3x256xf32, #tpu.memory_space<vmem>>, vector<1x3x256xf32>
    %7 = vector.shape_cast %6 : vector<1x3x256xf32> to vector<3x256xf32>
    %c0_11 = arith.constant 0 : index
    %c0_12 = arith.constant 0 : index
    %8 = vector.load %arg6[%c0_11, %c0_12] : memref<32x8xf32, #tpu.memory_space<vmem>>, vector<32x8xf32>
    %cst = arith.constant dense<0.000000e+00> : vector<32x256xf32>
    %9 = tpu.matmul %8, %5, %cst {dimension_numbers = #tpu.dot_dimension_numbers<[1], [0], [0], [1], [0, 0, 1, 1], [], []>} : vector<32x8xf32>, vector<8x256xf32>, vector<32x256xf32> -> vector<32x256xf32>
    %c0_13 = arith.constant 0 : index
    %c0_14 = arith.constant 0 : index
    %10 = vector.load %arg7[%c0_13, %c0_14] : memref<32x3xf32, #tpu.memory_space<vmem>>, vector<32x3xf32>
    %c0_15 = arith.constant 0 : index
    %c0_16 = arith.constant 0 : index
    %11 = vector.load %arg8[%c0_15, %c0_16] : memref<32x3xf32, #tpu.memory_space<vmem>>, vector<32x3xf32>
    %c0_17 = arith.constant 0 : index
    %c0_18 = arith.constant 0 : index
    %12 = vector.load %arg9[%c0_17, %c0_18] : memref<32x1xf32, #tpu.memory_space<vmem>>, vector<32x1xf32>
    %c0_19 = arith.constant 0 : index
    %c0_20 = arith.constant 0 : index
    %13 = vector.load %arg10[%c0_19, %c0_20] : memref<32x1xf32, #tpu.memory_space<vmem>>, vector<32x1xf32>
    %c0_21 = arith.constant 0 : index
    %c0_22 = arith.constant 0 : index
    %14 = vector.load %arg11[%c0_21, %c0_22] : memref<6x32xf32, #tpu.memory_space<vmem>>, vector<6x32xf32>
    %c0_23 = arith.constant 0 : index
    %c0_24 = arith.constant 0 : index
    %15 = vector.load %arg12[%c0_23, %c0_24] : memref<6x1xf32, #tpu.memory_space<vmem>>, vector<6x1xf32>
    %cst_25 = arith.constant 1.000000e+00 : f32
    %16 = vector.broadcast %cst_25 : f32 to vector<3x256xf32>
    %17 = arith.addf %1, %16 : vector<3x256xf32>
    %cst_26 = arith.constant 1.275000e+02 : f32
    %18 = vector.broadcast %cst_26 : f32 to vector<3x256xf32>
    %19 = arith.mulf %17, %18 : vector<3x256xf32>
    %cst_27 = arith.constant 1.700000e+02 : f32
    %20 = vector.broadcast %cst_27 : f32 to vector<3x256xf32>
    %21 = arith.divf %19, %20 : vector<3x256xf32>
    %22 = math.floor %21 : vector<3x256xf32>
    %cst_28 = arith.constant 1.700000e+02 : f32
    %23 = vector.broadcast %cst_28 : f32 to vector<3x256xf32>
    %24 = arith.mulf %22, %23 : vector<3x256xf32>
    %cst_29 = arith.constant 0.00784313772 : f32
    %25 = vector.broadcast %cst_29 : f32 to vector<3x256xf32>
    %26 = arith.mulf %24, %25 : vector<3x256xf32>
    %cst_30 = arith.constant 1.000000e+00 : f32
    %27 = vector.broadcast %cst_30 : f32 to vector<3x256xf32>
    %28 = arith.subf %26, %27 : vector<3x256xf32>
    %cst_31 = arith.constant 1.000000e+00 : f32
    %29 = vector.broadcast %cst_31 : f32 to vector<3x256xf32>
    %30 = arith.addf %3, %29 : vector<3x256xf32>
    %cst_32 = arith.constant 1.275000e+02 : f32
    %31 = vector.broadcast %cst_32 : f32 to vector<3x256xf32>
    %32 = arith.mulf %30, %31 : vector<3x256xf32>
    %cst_33 = arith.constant 1.700000e+02 : f32
    %33 = vector.broadcast %cst_33 : f32 to vector<3x256xf32>
    %34 = arith.divf %32, %33 : vector<3x256xf32>
    %35 = math.floor %34 : vector<3x256xf32>
    %cst_34 = arith.constant 1.700000e+02 : f32
    %36 = vector.broadcast %cst_34 : f32 to vector<3x256xf32>
    %37 = arith.mulf %35, %36 : vector<3x256xf32>
    %cst_35 = arith.constant 0.00784313772 : f32
    %38 = vector.broadcast %cst_35 : f32 to vector<3x256xf32>
    %39 = arith.mulf %37, %38 : vector<3x256xf32>
    %cst_36 = arith.constant 1.000000e+00 : f32
    %40 = vector.broadcast %cst_36 : f32 to vector<3x256xf32>
    %41 = arith.subf %39, %40 : vector<3x256xf32>
    %c0_37 = arith.constant 0 : index
    %c0_38 = arith.constant 0 : index
    %c0_39 = arith.constant 0 : index
    %c0_40 = arith.constant 0 : index
    %42 = vector.load %arg13[%c0_37, %c0_38, %c0_39, %c0_40] : memref<3x1x3x256xf32, #tpu.memory_space<vmem>>, vector<1x1x3x256xf32>
    %43 = vector.shape_cast %42 : vector<1x1x3x256xf32> to vector<3x256xf32>
    %44 = vector.shape_cast %28 : vector<3x256xf32> to vector<1x1x3x256xf32>
    tpu.vector_store %arg13[%c0_37, %c0_38, %c0_39, %c0_40], %44 {strides = array<i32>} : memref<3x1x3x256xf32, #tpu.memory_space<vmem>>, vector<1x1x3x256xf32>,
    %c0_41 = arith.constant 0 : index
    %c0_42 = arith.constant 0 : index
    %c0_43 = arith.constant 0 : index
    %c0_44 = arith.constant 0 : index
    %45 = vector.load %arg14[%c0_41, %c0_42, %c0_43, %c0_44] : memref<3x1x3x256xf32, #tpu.memory_space<vmem>>, vector<1x1x3x256xf32>
    %46 = vector.shape_cast %45 : vector<1x1x3x256xf32> to vector<3x256xf32>
    %47 = vector.shape_cast %41 : vector<3x256xf32> to vector<1x1x3x256xf32>
    tpu.vector_store %arg14[%c0_41, %c0_42, %c0_43, %c0_44], %47 {strides = array<i32>} : memref<3x1x3x256xf32, #tpu.memory_space<vmem>>, vector<1x1x3x256xf32>,
    %cst_45 = arith.constant dense<0.000000e+00> : vector<32x256xf32>
    %48 = tpu.matmul %10, %28, %cst_45 {dimension_numbers = #tpu.dot_dimension_numbers<[1], [0], [0], [1], [0, 0, 1, 1], [], []>} : vector<32x3xf32>, vector<3x256xf32>, vector<32x256xf32> -> vector<32x256xf32>
    %49 = arith.addf %9, %48 : vector<32x256xf32>
    %cst_46 = arith.constant dense<0.000000e+00> : vector<32x256xf32>
    %50 = tpu.matmul %11, %7, %cst_46 {dimension_numbers = #tpu.dot_dimension_numbers<[1], [0], [0], [1], [0, 0, 1, 1], [], []>} : vector<32x3xf32>, vector<3x256xf32>, vector<32x256xf32> -> vector<32x256xf32>
    %51 = arith.addf %49, %50 : vector<32x256xf32>
    %52 = vector.broadcast %12 : vector<32x1xf32> to vector<32x256xf32>
    %53 = arith.addf %51, %52 : vector<32x256xf32>
    %cst_47 = arith.constant 1.000000e+00 : f32
    %54 = vector.broadcast %cst_47 : f32 to vector<32x1xf32>
    %55 = arith.mulf %54, %13 : vector<32x1xf32>
    %56 = vector.broadcast %55 : vector<32x1xf32> to vector<32x256xf32>
    %57 = arith.addf %53, %56 : vector<32x256xf32>
    %cst_48 = arith.constant 0.000000e+00 : f32
    %58 = vector.broadcast %cst_48 : f32 to vector<32x256xf32>
    %59 = arith.maximumf %57, %58 : vector<32x256xf32>
    %cst_49 = arith.constant dense<0.000000e+00> : vector<6x256xf32>
    %60 = tpu.matmul %14, %59, %cst_49 {dimension_numbers = #tpu.dot_dimension_numbers<[1], [0], [0], [1], [0, 0, 1, 1], [], []>} : vector<6x32xf32>, vector<32x256xf32>, vector<6x256xf32> -> vector<6x256xf32>
    %61 = vector.broadcast %15 : vector<6x1xf32> to vector<6x256xf32>
    %62 = arith.addf %60, %61 : vector<6x256xf32>
    %63 = math.tanh %62 : vector<6x256xf32>
    %c0_50 = arith.constant 0 : index
    %c0_51 = arith.constant 0 : index
    %c0_52 = arith.constant 0 : index
    %c0_53 = arith.constant 0 : index
    %64 = vector.load %arg15[%c0_50, %c0_51, %c0_52, %c0_53] : memref<3x1x6x256xf32, #tpu.memory_space<vmem>>, vector<1x1x6x256xf32>
    %65 = vector.shape_cast %64 : vector<1x1x6x256xf32> to vector<6x256xf32>
    %66 = vector.shape_cast %63 : vector<6x256xf32> to vector<1x1x6x256xf32>
    tpu.vector_store %arg15[%c0_50, %c0_51, %c0_52, %c0_53], %66 {strides = array<i32>} : memref<3x1x6x256xf32, #tpu.memory_space<vmem>>, vector<1x1x6x256xf32>,
    %67 = vector.extract_strided_slice %63 {offsets = [0, 0], sizes = [3, 256], strides = [1, 1]} : vector<6x256xf32> to vector<3x256xf32>
    %cst_54 = arith.constant 1.000000e+00 : f32
    %68 = vector.broadcast %cst_54 : f32 to vector<3x256xf32>
    %69 = arith.addf %1, %68 : vector<3x256xf32>
    %cst_55 = arith.constant 1.275000e+02 : f32
    %70 = vector.broadcast %cst_55 : f32 to vector<3x256xf32>
    %71 = arith.mulf %69, %70 : vector<3x256xf32>
    %cst_56 = arith.constant 8.500000e+01 : f32
    %72 = vector.broadcast %cst_56 : f32 to vector<3x256xf32>
    %73 = arith.divf %71, %72 : vector<3x256xf32>
    %74 = math.floor %73 : vector<3x256xf32>
    %cst_57 = arith.constant 8.500000e+01 : f32
    %75 = vector.broadcast %cst_57 : f32 to vector<3x256xf32>
    %76 = arith.mulf %74, %75 : vector<3x256xf32>
    %cst_58 = arith.constant 0.00784313772 : f32
    %77 = vector.broadcast %cst_58 : f32 to vector<3x256xf32>
    %78 = arith.mulf %76, %77 : vector<3x256xf32>
    %cst_59 = arith.constant 1.000000e+00 : f32
    %79 = vector.broadcast %cst_59 : f32 to vector<3x256xf32>
    %80 = arith.subf %78, %79 : vector<3x256xf32>
    %cst_60 = arith.constant 1.000000e+00 : f32
    %81 = vector.broadcast %cst_60 : f32 to vector<3x256xf32>
    %82 = arith.addf %3, %81 : vector<3x256xf32>
    %cst_61 = arith.constant 1.275000e+02 : f32
    %83 = vector.broadcast %cst_61 : f32 to vector<3x256xf32>
    %84 = arith.mulf %82, %83 : vector<3x256xf32>
    %cst_62 = arith.constant 8.500000e+01 : f32
    %85 = vector.broadcast %cst_62 : f32 to vector<3x256xf32>
    %86 = arith.divf %84, %85 : vector<3x256xf32>
    %87 = math.floor %86 : vector<3x256xf32>
    %cst_63 = arith.constant 8.500000e+01 : f32
    %88 = vector.broadcast %cst_63 : f32 to vector<3x256xf32>
    %89 = arith.mulf %87, %88 : vector<3x256xf32>
    %cst_64 = arith.constant 0.00784313772 : f32
    %90 = vector.broadcast %cst_64 : f32 to vector<3x256xf32>
    %91 = arith.mulf %89, %90 : vector<3x256xf32>
    %cst_65 = arith.constant 1.000000e+00 : f32
    %92 = vector.broadcast %cst_65 : f32 to vector<3x256xf32>
    %93 = arith.subf %91, %92 : vector<3x256xf32>
    %c1 = arith.constant 1 : index
    %c0_66 = arith.constant 0 : index
    %c0_67 = arith.constant 0 : index
    %c0_68 = arith.constant 0 : index
    %94 = vector.load %arg13[%c1, %c0_66, %c0_67, %c0_68] : memref<3x1x3x256xf32, #tpu.memory_space<vmem>>, vector<1x1x3x256xf32>
    %95 = vector.shape_cast %94 : vector<1x1x3x256xf32> to vector<3x256xf32>
    %96 = vector.shape_cast %80 : vector<3x256xf32> to vector<1x1x3x256xf32>
    tpu.vector_store %arg13[%c1, %c0_66, %c0_67, %c0_68], %96 {strides = array<i32>} : memref<3x1x3x256xf32, #tpu.memory_space<vmem>>, vector<1x1x3x256xf32>,
    %c1_69 = arith.constant 1 : index
    %c0_70 = arith.constant 0 : index
    %c0_71 = arith.constant 0 : index
    %c0_72 = arith.constant 0 : index
    %97 = vector.load %arg14[%c1_69, %c0_70, %c0_71, %c0_72] : memref<3x1x3x256xf32, #tpu.memory_space<vmem>>, vector<1x1x3x256xf32>
    %98 = vector.shape_cast %97 : vector<1x1x3x256xf32> to vector<3x256xf32>
    %99 = vector.shape_cast %93 : vector<3x256xf32> to vector<1x1x3x256xf32>
    tpu.vector_store %arg14[%c1_69, %c0_70, %c0_71, %c0_72], %99 {strides = array<i32>} : memref<3x1x3x256xf32, #tpu.memory_space<vmem>>, vector<1x1x3x256xf32>,
    %cst_73 = arith.constant dense<0.000000e+00> : vector<32x256xf32>
    %100 = tpu.matmul %10, %80, %cst_73 {dimension_numbers = #tpu.dot_dimension_numbers<[1], [0], [0], [1], [0, 0, 1, 1], [], []>} : vector<32x3xf32>, vector<3x256xf32>, vector<32x256xf32> -> vector<32x256xf32>
    %101 = arith.addf %9, %100 : vector<32x256xf32>
    %cst_74 = arith.constant dense<0.000000e+00> : vector<32x256xf32>
    %102 = tpu.matmul %11, %67, %cst_74 {dimension_numbers = #tpu.dot_dimension_numbers<[1], [0], [0], [1], [0, 0, 1, 1], [], []>} : vector<32x3xf32>, vector<3x256xf32>, vector<32x256xf32> -> vector<32x256xf32>
    %103 = arith.addf %101, %102 : vector<32x256xf32>
    %104 = vector.broadcast %12 : vector<32x1xf32> to vector<32x256xf32>
    %105 = arith.addf %103, %104 : vector<32x256xf32>
    %cst_75 = arith.constant 2.000000e+00 : f32
    %106 = vector.broadcast %cst_75 : f32 to vector<32x1xf32>
    %107 = arith.mulf %106, %13 : vector<32x1xf32>
    %108 = vector.broadcast %107 : vector<32x1xf32> to vector<32x256xf32>
    %109 = arith.addf %105, %108 : vector<32x256xf32>
    %cst_76 = arith.constant 0.000000e+00 : f32
    %110 = vector.broadcast %cst_76 : f32 to vector<32x256xf32>
    %111 = arith.maximumf %109, %110 : vector<32x256xf32>
    %cst_77 = arith.constant dense<0.000000e+00> : vector<6x256xf32>
    %112 = tpu.matmul %14, %111, %cst_77 {dimension_numbers = #tpu.dot_dimension_numbers<[1], [0], [0], [1], [0, 0, 1, 1], [], []>} : vector<6x32xf32>, vector<32x256xf32>, vector<6x256xf32> -> vector<6x256xf32>
    %113 = vector.broadcast %15 : vector<6x1xf32> to vector<6x256xf32>
    %114 = arith.addf %112, %113 : vector<6x256xf32>
    %115 = math.tanh %114 : vector<6x256xf32>
    %c1_78 = arith.constant 1 : index
    %c0_79 = arith.constant 0 : index
    %c0_80 = arith.constant 0 : index
    %c0_81 = arith.constant 0 : index
    %116 = vector.load %arg15[%c1_78, %c0_79, %c0_80, %c0_81] : memref<3x1x6x256xf32, #tpu.memory_space<vmem>>, vector<1x1x6x256xf32>
    %117 = vector.shape_cast %116 : vector<1x1x6x256xf32> to vector<6x256xf32>
    %118 = vector.shape_cast %115 : vector<6x256xf32> to vector<1x1x6x256xf32>
    tpu.vector_store %arg15[%c1_78, %c0_79, %c0_80, %c0_81], %118 {strides = array<i32>} : memref<3x1x6x256xf32, #tpu.memory_space<vmem>>, vector<1x1x6x256xf32>,
    %119 = vector.extract_strided_slice %115 {offsets = [0, 0], sizes = [3, 256], strides = [1, 1]} : vector<6x256xf32> to vector<3x256xf32>
    %c2 = arith.constant 2 : index
    %c0_82 = arith.constant 0 : index
    %c0_83 = arith.constant 0 : index
    %c0_84 = arith.constant 0 : index
    %120 = vector.load %arg13[%c2, %c0_82, %c0_83, %c0_84] : memref<3x1x3x256xf32, #tpu.memory_space<vmem>>, vector<1x1x3x256xf32>
    %121 = vector.shape_cast %120 : vector<1x1x3x256xf32> to vector<3x256xf32>
    %122 = vector.shape_cast %1 : vector<3x256xf32> to vector<1x1x3x256xf32>
    tpu.vector_store %arg13[%c2, %c0_82, %c0_83, %c0_84], %122 {strides = array<i32>} : memref<3x1x3x256xf32, #tpu.memory_space<vmem>>, vector<1x1x3x256xf32>,
    %c2_85 = arith.constant 2 : index
    %c0_86 = arith.constant 0 : index
    %c0_87 = arith.constant 0 : index
    %c0_88 = arith.constant 0 : index
    %123 = vector.load %arg14[%c2_85, %c0_86, %c0_87, %c0_88] : memref<3x1x3x256xf32, #tpu.memory_space<vmem>>, vector<1x1x3x256xf32>
    %124 = vector.shape_cast %123 : vector<1x1x3x256xf32> to vector<3x256xf32>
    %125 = vector.shape_cast %3 : vector<3x256xf32> to vector<1x1x3x256xf32>
    tpu.vector_store %arg14[%c2_85, %c0_86, %c0_87, %c0_88], %125 {strides = array<i32>} : memref<3x1x3x256xf32, #tpu.memory_space<vmem>>, vector<1x1x3x256xf32>,
    %cst_89 = arith.constant dense<0.000000e+00> : vector<32x256xf32>
    %126 = tpu.matmul %10, %1, %cst_89 {dimension_numbers = #tpu.dot_dimension_numbers<[1], [0], [0], [1], [0, 0, 1, 1], [], []>} : vector<32x3xf32>, vector<3x256xf32>, vector<32x256xf32> -> vector<32x256xf32>
    %127 = arith.addf %9, %126 : vector<32x256xf32>
    %cst_90 = arith.constant dense<0.000000e+00> : vector<32x256xf32>
    %128 = tpu.matmul %11, %119, %cst_90 {dimension_numbers = #tpu.dot_dimension_numbers<[1], [0], [0], [1], [0, 0, 1, 1], [], []>} : vector<32x3xf32>, vector<3x256xf32>, vector<32x256xf32> -> vector<32x256xf32>
    %129 = arith.addf %127, %128 : vector<32x256xf32>
    %130 = vector.broadcast %12 : vector<32x1xf32> to vector<32x256xf32>
    %131 = arith.addf %129, %130 : vector<32x256xf32>
    %cst_91 = arith.constant 3.000000e+00 : f32
    %132 = vector.broadcast %cst_91 : f32 to vector<32x1xf32>
    %133 = arith.mulf %132, %13 : vector<32x1xf32>
    %134 = vector.broadcast %133 : vector<32x1xf32> to vector<32x256xf32>
    %135 = arith.addf %131, %134 : vector<32x256xf32>
    %cst_92 = arith.constant 0.000000e+00 : f32
    %136 = vector.broadcast %cst_92 : f32 to vector<32x256xf32>
    %137 = arith.maximumf %135, %136 : vector<32x256xf32>
    %cst_93 = arith.constant dense<0.000000e+00> : vector<6x256xf32>
    %138 = tpu.matmul %14, %137, %cst_93 {dimension_numbers = #tpu.dot_dimension_numbers<[1], [0], [0], [1], [0, 0, 1, 1], [], []>} : vector<6x32xf32>, vector<32x256xf32>, vector<6x256xf32> -> vector<6x256xf32>
    %139 = vector.broadcast %15 : vector<6x1xf32> to vector<6x256xf32>
    %140 = arith.addf %138, %139 : vector<6x256xf32>
    %141 = math.tanh %140 : vector<6x256xf32>
    %c2_94 = arith.constant 2 : index
    %c0_95 = arith.constant 0 : index
    %c0_96 = arith.constant 0 : index
    %c0_97 = arith.constant 0 : index
    %142 = vector.load %arg15[%c2_94, %c0_95, %c0_96, %c0_97] : memref<3x1x6x256xf32, #tpu.memory_space<vmem>>, vector<1x1x6x256xf32>
    %143 = vector.shape_cast %142 : vector<1x1x6x256xf32> to vector<6x256xf32>
    %144 = vector.shape_cast %141 : vector<6x256xf32> to vector<1x1x6x256xf32>
    tpu.vector_store %arg15[%c2_94, %c0_95, %c0_96, %c0_97], %144 {strides = array<i32>} : memref<3x1x6x256xf32, #tpu.memory_space<vmem>>, vector<1x1x6x256xf32>,
    return
  }
  func.func @transform_0(%arg0: i32, %arg1: i32) -> (i32, i32, i32) {
    %c0_i32 = arith.constant 0 : i32
    %c0_i32_0 = arith.constant 0 : i32
    return %arg0, %c0_i32, %arg1 : i32, i32, i32
  }
  func.func @transform_1(%arg0: i32, %arg1: i32) -> (i32, i32, i32) {
    %c0_i32 = arith.constant 0 : i32
    %c0_i32_0 = arith.constant 0 : i32
    return %arg0, %c0_i32, %arg1 : i32, i32, i32
  }
  func.func @transform_2(%arg0: i32, %arg1: i32) -> (i32, i32, i32) {
    %c0_i32 = arith.constant 0 : i32
    %c0_i32_0 = arith.constant 0 : i32
    return %arg0, %c0_i32, %arg1 : i32, i32, i32
  }
  func.func @transform_3(%arg0: i32, %arg1: i32) -> (i32, i32, i32) {
    %c0_i32 = arith.constant 0 : i32
    %c0_i32_0 = arith.constant 0 : i32
    return %arg0, %c0_i32, %arg1 : i32, i32, i32
  }
  func.func @transform_4(%arg0: i32, %arg1: i32) -> (i32, i32) {
    %c0_i32 = arith.constant 0 : i32
    %c0_i32_0 = arith.constant 0 : i32
    %c0_i32_1 = arith.constant 0 : i32
    return %c0_i32, %c0_i32_0 : i32, i32
  }
  func.func @transform_5(%arg0: i32, %arg1: i32) -> (i32, i32) {
    %c0_i32 = arith.constant 0 : i32
    %c0_i32_0 = arith.constant 0 : i32
    %c0_i32_1 = arith.constant 0 : i32
    return %c0_i32, %c0_i32_0 : i32, i32
  }
  func.func @transform_6(%arg0: i32, %arg1: i32) -> (i32, i32) {
    %c0_i32 = arith.constant 0 : i32
    %c0_i32_0 = arith.constant 0 : i32
    %c0_i32_1 = arith.constant 0 : i32
    return %c0_i32, %c0_i32_0 : i32, i32
  }
  func.func @transform_7(%arg0: i32, %arg1: i32) -> (i32, i32) {
    %c0_i32 = arith.constant 0 : i32
    %c0_i32_0 = arith.constant 0 : i32
    %c0_i32_1 = arith.constant 0 : i32
    return %c0_i32, %c0_i32_0 : i32, i32
  }
  func.func @transform_8(%arg0: i32, %arg1: i32) -> (i32, i32) {
    %c0_i32 = arith.constant 0 : i32
    %c0_i32_0 = arith.constant 0 : i32
    %c0_i32_1 = arith.constant 0 : i32
    return %c0_i32, %c0_i32_0 : i32, i32
  }
  func.func @transform_9(%arg0: i32, %arg1: i32) -> (i32, i32) {
    %c0_i32 = arith.constant 0 : i32
    %c0_i32_0 = arith.constant 0 : i32
    %c0_i32_1 = arith.constant 0 : i32
    return %c0_i32, %c0_i32_0 : i32, i32
  }
  func.func @transform_10(%arg0: i32, %arg1: i32) -> (i32, i32) {
    %c0_i32 = arith.constant 0 : i32
    %c0_i32_0 = arith.constant 0 : i32
    %c0_i32_1 = arith.constant 0 : i32
    return %c0_i32, %c0_i32_0 : i32, i32
  }
  func.func @transform_11(%arg0: i32, %arg1: i32) -> (i32, i32, i32, i32) {
    %c0_i32 = arith.constant 0 : i32
    %c0_i32_0 = arith.constant 0 : i32
    %c0_i32_1 = arith.constant 0 : i32
    return %c0_i32, %arg0, %c0_i32_0, %arg1 : i32, i32, i32, i32
  }
  func.func @transform_12(%arg0: i32, %arg1: i32) -> (i32, i32, i32, i32) {
    %c0_i32 = arith.constant 0 : i32
    %c0_i32_0 = arith.constant 0 : i32
    %c0_i32_1 = arith.constant 0 : i32
    return %c0_i32, %arg0, %c0_i32_0, %arg1 : i32, i32, i32, i32
  }
  func.func @transform_13(%arg0: i32, %arg1: i32) -> (i32, i32, i32, i32) {
    %c0_i32 = arith.constant 0 : i32
    %c0_i32_0 = arith.constant 0 : i32
    %c0_i32_1 = arith.constant 0 : i32
    return %c0_i32, %arg0, %c0_i32_0, %arg1 : i32, i32, i32, i32
  }
}

</mosaic_0001>

<bundles_post_ra>
// kernel: tpu_custom_call.1
= control target key start
LH: loop header
LB: loop body
LE: loop exit
PB: predicated region body
PF: predicated region fallthrough
CT: control target
= control target key end

     0   :  { %s2794_s0 = inlined_call_operand.vmem [shape: f32[2,3,256], index: 0, kind: input, shape index: {}]   ;;  %s2795_s1 = inlined_call_operand.vmem [shape: f32[2,3,256], index: 1, kind: input, shape index: {}]   ;;  %s2796_s2 = inlined_call_operand.vmem [shape: f32[2,8,256], index: 2, kind: input, shape index: {}]   ;;  %s2797_s3 = inlined_call_operand.vmem [shape: f32[2,3,256], index: 3, kind: input, shape index: {}]   ;;  %s2798_s4 = inlined_call_operand.vmem [shape: f32[32,8], index: 4, kind: input, shape index: {}]   ;;  %s2799_s5 = inlined_call_operand.vmem [shape: f32[32,3], index: 5, kind: input, shape index: {}]   ;;  %s2800_s6 = inlined_call_operand.vmem [shape: f32[32,3], index: 6, kind: input, shape index: {}]   ;;  %s2801_s7 = inlined_call_operand.vmem [shape: f32[32,1], index: 7, kind: input, shape index: {}]   ;;  %s2802_s8 = inlined_call_operand.vmem [shape: f32[32,1], index: 8, kind: input, shape index: {}]   ;;  %s2803_s9 = inlined_call_operand.vmem [shape: f32[6,32], index: 9, kind: input, shape index: {}]   ;;  %s2804_s10 = inlined_call_operand.vmem [shape: f32[6,1], index: 10, kind: input, shape index: {}]   ;;  %s2805_s11 = inlined_call_operand.vmem [shape: f32[3,2,3,256], index: 11, kind: output, shape index: {0}]   ;;  %s2806_s12 = inlined_call_operand.vmem [shape: f32[3,2,3,256], index: 12, kind: output, shape index: {1}]   ;;  %s2807_s13 = inlined_call_operand.vmem [shape: f32[3,2,6,256], index: 13, kind: output, shape index: {2}]  }
   0x1   :  { %2814 = sst [smem:[#allocation11_spill]] %s2805_s11 }
   0x2   :  { %2815 = sst [smem:[#allocation12_spill]] %s2806_s12 }
   0x3   :  { %2816 = sst [smem:[#allocation13_spill]] %s2807_s13 }
   0x4   :  { %s2382_s25 = smov 0   ;;  %s2384_s26 = smov 0  }
   0x5   :  { %s2386_s27 = smov 0   ;;  %s2388_s28 = smov 0  }
   0x6   :  { %s2390_s29 = smov 0  }
   0x7 LB: > { %2817 = sst [smem:[#allocation5_spill]] %s2296_s26  ;;  %s2127_s30 = sadd.s32 4294967295, %s2308_s29   ;;  %s2308_s29 = sphi %s2390_s29, %s24_s29   ;;  %s2304_s28 = sphi %s2388_s28, %s2835_s28   ;;  %s2300_s27 = sphi %s2386_s27, %s2834_s27   ;;  %s2296_s26 = sphi %s2384_s26, %s2833_s26   ;;  %s2292_s25 = sphi %s2382_s25, %s2832_s25  }
   0x8   : > { %2818 = sst [smem:[#allocation6_spill]] %s2300_s27  ;;  %s36_s14 = sadd.s32 1, %s2304_s28 }
   0x9   : > { %2819 = sst [smem:[#allocation7_spill]] %s2304_s28  ;;  %p38_p0 = scmp.ge.s32.totalorder %s36_s14, 2 }
   0xa   : > { %2820 = sst [smem:[#allocation8_spill]] %s2308_s29  ;;  %s304_s15 = sadd.s32 1, %s2296_s26 }
   0xb   : > { %p314_p1 = scmp.ne.s32.totalorder %s2296_s26, %s2292_s25  ;;  %p315_p2 = scmp.eq.s32.totalorder %s2127_s30, 1 }
   0xc   : > { %s2837_s14 = smov (%p38_p0, %s36_s14), 0  ;;  %p2131_p4 = scmp.ge.s32.totalorder %s2308_s29, 1 }
   0xd   : > { %2821 = sst [smem:[#allocation9_spill]] %s2837_s14  ;;  %p2414_p3 = por %p315_p2, %p314_p1 }
   0xe   : > { %s299_s17 = ssub.s32 %s2304_s28, %s2837_s14  ;;  %p468_p5 = scmp.lt.s32.totalorder %s2308_s29, 3 }
   0xf   : > { %p302_p6 = scmp.eq.s32.totalorder %s299_s17, 0 }
  0x10   : > { %p469_p7 = pnand %p2131_p4, %p468_p5 }
  0x11   : > { %s2423_s18 = scalar_select %p302_p6, %s2296_s26, %s304_s15  }
  0x12   : > { %472 = sbr.rel (%p469_p7) target bundleno = 1376 (0x560), region = 64  ;;  %s2808_s19 = sand.u32 (!%p469_p7), 1, %s2292_s25  }
  0x13   : > { %2823 = sst [smem:[#allocation10_spill]] %s2423_s18  ;;  %p551_p8 = scmp.lt.s32.totalorder (!%p469_p7), %s2300_s27, 1 }
  0x14   : > { %s2210_s20 = smul.u32 (!%p469_p7), 24, %s2808_s19 }
  0x16   : > { %s2464_s29 = scalar_lea.vmem (!%p469_p7), [#allocation2], %s2210_s20  ;;  %s2468_s12 = scalar_lea.vmem (!%p469_p7), [#allocation3], %s2210_s20 }
  0x17   : > { %v2310_v0 = vmov 0.0   ;;  %v2311_v1 = vmov 0   ;;  %v715_v2 = vld [vmem:[%s2801_s7 + $0x18] sm:$0xff]  ;;  %s552_s23 = scalar_select %p551_p8, %s2300_s27, 1  ;;  %v714_v4 = vld [vmem:[%s2801_s7 + $0x10] sm:$0xff]  ;;  %v713_v5 = vld [vmem:[%s2801_s7 + $0x8] sm:$0xff] }
  0x18   : > { %679 = vmatprep.mubr.f32.mxu0 %v2310_v0  ;;  %823 = vmatprep.mubr.f32.mxu1 %v2310_v0  ;;  %v2438_v3 = vld [vmem:[%s2802_s8 + $0x18] sm:$0xff]  ;;  %v598_v6 = vld [vmem:[%s2798_s4] sm:$0xff]  ;;  %vm602_vm0 = vcmask 64512   ;;  %vm754_vm1 = vcmask 1042432   ;;  %v718_v17 = vld [vmem:[%s2802_s8 + $0x10] sm:$0xff]  ;;  %vm741_vm2 = vcmask 23552  }
  0x19   : > { %2254 = vset.pattern.permute.xlu0 %v2311_v1  ;;  %2255 = vset.pattern.permute.xlu1 %v2311_v1  ;;  %s2203_s19 = sshll.u32 %s552_s23, 3  ;;  %s2205_s14 = sshll.u32 %s552_s23, 4  ;;  %v712_v18 = vld [vmem:[%s2801_s7] sm:$0xff]  ;;  %v599_v19 = vld [vmem:[%s2798_s4 + $0x8] sm:$0xff]  ;;  %v600_v30 = vld [vmem:[%s2798_s4 + $0x10] sm:$0xff]  ;;  %v1351_v33 = vmul.f32 2.0, %v2438_v3 }
  0x1a   : > { %988 = vperm.xlu0 %2254, %v715_v2   ;;  %1016 = vperm.xlu1 %2255, %v2438_v3   ;;  %s558_s26 = scalar_lea.vmem %s2794_s0, %s2203_s19  ;;  %s568_s30 = scalar_lea.vmem %s2795_s1, %s2203_s19  ;;  %v717_v26 = vld [vmem:[%s2802_s8 + $0x8] sm:$0xff]  ;;  %v716_v27 = vld [vmem:[%s2802_s8] sm:$0xff]  ;;  %v601_v39 = vld [vmem:[%s2798_s4 + $0x18] sm:$0xff]  ;;  %v1350_v41 = vmul.f32 2.0, %v718_v17  ;;  %v1685_v47 = vmul.f32 3.0, %v2438_v3  ;;  %v1684_v50 = vmul.f32 3.0, %v718_v17 }
  0x1b   : > { %s578_s23 = scalar_lea.vmem %s2796_s2, %s2205_s14  ;;  %s588_s28 = scalar_lea.vmem %s2797_s3, %s2203_s19  ;;  %v2462_v7 = vld [vmem:[%s558_s26] sm:$0x77]  ;;  %v1349_v43 = vmul.f32 2.0, %v717_v26  ;;  %v1348_v46 = vmul.f32 2.0, %v716_v27  ;;  %v2534_v48 = vld [vmem:[%s2799_s5 + $0x8] sm:$0xff]  ;;  %v1683_v51 = vmul.f32 3.0, %v717_v26 }
  0x1c   : > { %v594_v8 = vld [vmem:[%s568_s30] sm:$0x77]  ;;  %v596_v9 = vld [vmem:[%s578_s23 + $0x8] sm:$0xff]  ;;  %2178 = vst [vmem:[%s2464_s29 + $0x10] sm:$0x77] %v2462_v7  ;;  %v722_v13 = vadd.f32 1.0, %v2462_v7 }
  0x1d   : > { %v597_v10 = vld [vmem:[%s588_s28] sm:$0x77]  ;;  %v730_v11 = vadd.f32 1.0, %v594_v8  ;;  %2179 = vst [vmem:[%s2468_s12 + $0x10] sm:$0x77] %v594_v8  ;;  %645 = vmatprep.subr.mxu0 %v596_v9  ;;  %v2540_v49 = vld [vmem:[%s2800_s6 + $0x8] sm:$0xff] }
  0x1e   : > { %983 = vperm.xlu0 %2254, %v714_v4   ;;  %v595_v12 = vld [vmem:[%s578_s23] sm:$0xff]  ;;  %978 = vperm.xlu1 %2255, %v713_v5   ;;  %v857_v14 = vcombine.high %v597_v10, %v597_v10  ;;  %v2472_v16 = vmul.f32 127.5, %v722_v13  ;;  %v2550_v52 = vld [vmem:[%s2799_s5 + $0x10] sm:$0xff]  ;;  %v1682_v54 = vmul.f32 3.0, %v716_v27  ;;  %v2566_v55 = vld [vmem:[%s2799_s5 + $0x18] sm:$0xff]  ;;  %vm1040_vm3 = vcmask 261120  }
  0x1f   : > { %v731_v15 = vmul.f32 127.5, %v730_v11  ;;  %646 = vmatpush1.msra.mxu0 %v595_v12  ;;  %v721_v32 = vld [vmem:[%s2804_s10] sm:$0x3f]  ;;  %v2556_v53 = vld [vmem:[%s2800_s6 + $0x10] sm:$0xff]  ;;  %v2572_v56 = vld [vmem:[%s2800_s6 + $0x18] sm:$0xff]  ;;  %s2824_s26 = sand.u32 1, %s2292_s25  }
  0x20   : > { %2140 = vmatmul.mubr.msk.f32.vlgmr.msra.gmra.mxu0 %vm602_vm0, %v598_v6  ;;  %2152 = vmatprep.subr.msk.mxu0 %vm754_vm1, %v857_v14  ;;  %v725_v22 = vmul.f32 0.005882353, %v2472_v16  ;;  %v2515_v44 = vld [vmem:[%s2799_s5] sm:$0xff]  ;;  %v1120_v57 = vmul.f32 0.011764706, %v2472_v16  ;;  %s2211_s27 = smul.u32 48, %s2824_s26 }
  0x21   : > { %v732_v20 = vmul.f32 0.005882353, %v731_v15  ;;  %v1125_v21 = vmul.f32 0.011764706, %v731_v15  ;;  %685 = vmatprep.mubr.f32.mxu0 %v2310_v0  ;;  %2153 = vmatpush1.msk.msra.mxu0 %vm754_vm1, %v597_v10  ;;  %v2522_v45 = vld [vmem:[%s2800_s6] sm:$0xff]  ;;  %s2825_s25 = sld [smem:[#allocation6_spill]] (%p2414_p3) }
  0x22   : > { %1011 = vperm.xlu0 %2254, %v718_v17   ;;  %973 = vperm.xlu1 %2255, %v712_v18   ;;  %v726_v25 = vfloor.f32 %v725_v22  ;;  %v1121_v58 = vfloor.f32 %v1120_v57  ;;  %s2656_s14 = scalar_lea.vmem [#allocation4], %s2211_s27  ;;  %s2826_s21 = sld [smem:[#allocation11_spill]] (%p2414_p3) }
  0x23   : > { %v733_v23 = vfloor.f32 %v732_v20  ;;  %v1126_v24 = vfloor.f32 %v1125_v21 }
  0x24   : > { %2141 = vmatmul.mubr.msk.f32.gmra.mxu0 %vm602_vm0, %v599_v19  ;;  %v727_v31 = vmul.f32 170.0, %v726_v25  ;;  %v1122_v59 = vmul.f32 85.0, %v1121_v58 }
  0x25   : > { %v734_v28 = vmul.f32 170.0, %v733_v23  ;;  %v1127_v29 = vmul.f32 85.0, %v1126_v24  ;;  %691 = vmatprep.mubr.f32.mxu0 %v2310_v0 }
  0x26   : > { %1006 = vperm.xlu0 %2254, %v717_v26   ;;  %1001 = vperm.xlu1 %2255, %v716_v27   ;;  %v728_v36 = vmul.f32 0.007843138, %v727_v31  ;;  %v1123_v60 = vmul.f32 0.007843138, %v1122_v59 }
  0x27   : > { %v735_v34 = vmul.f32 0.007843138, %v734_v28  ;;  %v1128_v35 = vmul.f32 0.007843138, %v1127_v29  ;;  %s2207_s18 = sshll.u32 (%p2414_p3), %s2825_s25, 3 }
  0x28   : > { %2142 = vmatmul.mubr.msk.f32.gmra.mxu0 %vm602_vm0, %v600_v30  ;;  %v2144_v40 = vadd.f32 -1.0, %v728_v36  ;;  %v2581_v61 = vadd.f32 -1.0, %v1123_v60  ;;  %s1817_s22 = scalar_lea.vmem (%p2414_p3), %s2826_s21, %s2207_s18 }
  0x29   : > { %v2145_v37 = vadd.f32 -1.0, %v735_v34  ;;  %v2160_v38 = vadd.f32 -1.0, %v1128_v35  ;;  %697 = vmatprep.mubr.f32.mxu0 %v2310_v0 }
  0x2a   : > { %1037 = vperm.xlu0 %2254, %v721_v32   ;;  %1369 = vperm.xlu1 %2255, %v1351_v33   ;;  %737 = vst [vmem:[%s2464_s29] sm:$0x77] %v2144_v40  ;;  %v740_v42 = vcombine.high %v2144_v40, %v2144_v40  ;;  %2161 = vst [vmem:[%s2464_s29 + $0x8] sm:$0x77] %v2581_v61 }
  0x2b   : > { %738 = vst [vmem:[%s2468_s12] sm:$0x77] %v2145_v37  ;;  %2162 = vst [vmem:[%s2468_s12 + $0x8] sm:$0x77] %v2160_v38 }
  0x2c   : > { %2143 = vmatmul.mubr.msk.f32.gmra.mxu0 %vm602_vm0, %v601_v39  ;;  %2146 = vmatprep.subr.msk.mxu1 %vm754_vm1, %v740_v42 }
  0x2d   : > { %938 = vmatprep.mubr.f32.mxu0 %v2310_v0  ;;  %2147 = vmatpush1.msk.msra.mxu1 %vm754_vm1, %v2144_v40 }
  0x2e   : > { %1364 = vperm.xlu0 %2254, %v1350_v41   ;;  %2148 = vmatmul.mubr.msk.f32.vlgmr.msra.gmra.mxu1 %vm741_vm2, %v2515_v44 }
  0x2f   : > { %1359 = vperm.xlu1 %2255, %v1349_v43   ;;  %829 = vmatprep.mubr.f32.mxu1 %v2310_v0 }
  0x30   : > { %2154 = vmatmul.mubr.msk.f32.vlgmr.msra.gmra.mxu0 %vm741_vm2, %v2522_v45 }
  0x31   : > { %944 = vmatprep.mubr.f32.mxu0 %v2310_v0 }
  0x32   : > { %1354 = vperm.xlu0 %2254, %v1348_v46   ;;  %2149 = vmatmul.mubr.msk.f32.gmra.mxu1 %vm741_vm2, %v2534_v48 }
  0x33   : > { %1703 = vperm.xlu1 %2255, %v1685_v47   ;;  %835 = vmatprep.mubr.f32.mxu1 %v2310_v0 }
  0x34   : > { %2155 = vmatmul.mubr.msk.f32.gmra.mxu0 %vm741_vm2, %v2540_v49 }
  0x35   : > { %950 = vmatprep.mubr.f32.mxu0 %v2310_v0 }
  0x36   : > { %1698 = vperm.xlu0 %2254, %v1684_v50   ;;  %2150 = vmatmul.mubr.msk.f32.gmra.mxu1 %vm741_vm2, %v2550_v52 }
  0x37   : > { %1693 = vperm.xlu1 %2255, %v1683_v51   ;;  %841 = vmatprep.mubr.f32.mxu1 %v2310_v0 }
  0x38   : > { %2156 = vmatmul.mubr.msk.f32.gmra.mxu0 %vm741_vm2, %v2556_v53 }
  0x39   : > { %956 = vmatprep.mubr.f32.mxu0 %v2310_v0 }
  0x3a   : > { %1688 = vperm.xlu0 %2254, %v1682_v54   ;;  %2151 = vmatmul.mubr.msk.f32.gmra.mxu1 %vm741_vm2, %v2566_v55 }
  0x3b   : > { %1108 = vmatprep.mubr.f32.mxu1 %v2310_v0 }
  0x3c   : > { %2157 = vmatmul.mubr.msk.f32.gmra.mxu0 %vm741_vm2, %v2572_v56 }
  0x3d   : > { %1307 = vmatprep.mubr.f32.mxu0 %v2310_v0 }
  0x95   : > { %v2601_v12 = vpop.permute.xlu0 %988  ;;  %v1017_v15 = vpop.permute.xlu1 %1016 }
  0x99   : > { %v2603_v20 = vpop.permute.xlu0 %983  ;;  %v2608_v26 = vpop.permute.xlu1 %978 }
  0x9d   : > { %v1012_v39 = vpop.permute.xlu0 %1011  ;;  %v2617_v50 = vpop.permute.xlu1 %973 }
  0xe0   : > { %v2585_v62 = vpop.f32.mrf.mxu0 }
  0xe2   : > { %v2587_v63 = vpop.f32.mrf.mxu0 }
  0xe4   : > { %v2589_v1 = vpop.f32.mrf.mxu0 }
  0xe6   : > { %v2591_v2 = vpop.f32.mrf.mxu0 }
  0xe8   : > { %v2593_v3 = vpop.f32.mrf.mxu0 }
  0xea   : > { %v2595_v4 = vpop.f32.mrf.mxu0 }
  0xec   : > { %v2597_v5 = vpop.f32.mrf.mxu0 }
  0xee   : > { %v2599_v6 = vpop.f32.mrf.mxu0  ;;  %v825_v8 = vpop.f32.mrf.mxu1 }
  0xef   : > { %v848_v33 = vadd.f32 %v825_v8, %v2585_v62 }
  0xf0   : > { %v940_v9 = vpop.f32.mrf.mxu0  ;;  %v827_v10 = vpop.f32.mrf.mxu1 }
  0xf1   : > { %v849_v29 = vadd.f32 %v827_v10, %v2587_v63  ;;  %v963_v51 = vadd.f32 %v940_v9, %v848_v33  ;;  %v1002_v9 = vpop.permute.xlu1 %1001 }
  0xf2   : > { %v942_v11 = vpop.f32.mrf.mxu0  ;;  %v831_v13 = vpop.f32.mrf.mxu1 }
  0xf3   : > { %v850_v27 = vadd.f32 %v831_v13, %v2589_v1  ;;  %v964_v42 = vadd.f32 %v942_v11, %v849_v29  ;;  %v1007_v13 = vpop.permute.xlu0 %1006  ;;  %v1135_v29 = vcombine.high %v2581_v61, %v2581_v61 }
  0xf4   : > { %v946_v14 = vpop.f32.mrf.mxu0  ;;  %v833_v16 = vpop.f32.mrf.mxu1 }
  0xf5   : > { %v851_v23 = vadd.f32 %v833_v16, %v2591_v2  ;;  %v965_v40 = vadd.f32 %v946_v14, %v850_v27  ;;  %v992_v8 = vadd.f32 %v2617_v50, %v964_v42  ;;  %v991_v14 = vadd.f32 %v2617_v50, %v963_v51 }
  0xf6   : > { %v948_v17 = vpop.f32.mrf.mxu0  ;;  %v837_v18 = vpop.f32.mrf.mxu1 }
  0xf7   : > { %v852_v21 = vadd.f32 %v837_v18, %v2593_v3  ;;  %v966_v36 = vadd.f32 %v948_v17, %v851_v23  ;;  %v993_v59 = vadd.f32 %v2608_v26, %v965_v40  ;;  %v1020_v23 = vadd.f32 %v1002_v9, %v992_v8 }
  0xf8   : > { %v952_v19 = vpop.f32.mrf.mxu0  ;;  %v839_v22 = vpop.f32.mrf.mxu1 }
  0xf9   : > { %v853_v24 = vadd.f32 %v839_v22, %v2595_v4  ;;  %v967_v34 = vadd.f32 %v952_v19, %v852_v21  ;;  %v994_v57 = vadd.f32 %v2608_v26, %v966_v36  ;;  %v1021_v19 = vadd.f32 %v1007_v13, %v993_v59 }
  0xfa   : > { %v954_v25 = vpop.f32.mrf.mxu0  ;;  %v843_v28 = vpop.f32.mrf.mxu1 }
  0xfb   : > { %v968_v30 = vadd.f32 %v954_v25, %v853_v24  ;;  %v854_v31 = vadd.f32 %v843_v28, %v2597_v5  ;;  %v995_v54 = vadd.f32 %v2603_v20, %v967_v34  ;;  %v1022_v18 = vadd.f32 %v1007_v13, %v994_v57 }
  0xfc   : > { %v958_v32 = vpop.f32.mrf.mxu0  ;;  %v845_v35 = vpop.f32.mrf.mxu1  ;;  %v1019_v24 = vadd.f32 %v1002_v9, %v991_v14  ;;  %v1029_v28 = vmax.f32 %v1021_v19, 0.0 }
  0xfd   : > { %v969_v37 = vadd.f32 %v958_v32, %v854_v31  ;;  %v855_v38 = vadd.f32 %v845_v35, %v2599_v6  ;;  %v996_v43 = vadd.f32 %v2603_v20, %v968_v30  ;;  %v1023_v16 = vadd.f32 %v1012_v39, %v995_v54  ;;  %v2630_v31 = vld [vmem:[%s2803_s9] sm:$0x3f] }
  0xfe   : > { %v960_v41 = vpop.f32.mrf.mxu0  ;;  %v1030_v27 = vmax.f32 %v1022_v18, 0.0  ;;  %v1027_v30 = vmax.f32 %v1019_v24, 0.0 }
  0xff   : > { %v997_v46 = vadd.f32 %v2601_v12, %v969_v37  ;;  %v970_v47 = vadd.f32 %v960_v41, %v855_v38  ;;  %v1024_v11 = vadd.f32 %v1012_v39, %v996_v43  ;;  %v1031_v25 = vmax.f32 %v1023_v16, 0.0 }
 0x101   : > { %v998_v58 = vadd.f32 %v2601_v12, %v970_v47  ;;  %v1025_v60 = vadd.f32 %v1017_v15, %v997_v46  ;;  %v1032_v22 = vmax.f32 %v1024_v11, 0.0 }
 0x103   : > { %v1026_v10 = vadd.f32 %v1017_v15, %v998_v58  ;;  %v1033_v21 = vmax.f32 %v1025_v60, 0.0  ;;  %v1028_v15 = vmax.f32 %v1020_v23, 0.0  ;;  %v1370_v23 = vpop.permute.xlu1 %1369 }
 0x105   : > { %v1034_v17 = vmax.f32 %v1026_v10, 0.0 }
 0x107   : > { %1068 = vmatprep.subr.mxu1 %v1034_v17 }
 0x108   : > { %1069 = vmatpush1.msra.mxu1 %v1033_v21 }
 0x109   : > { %1070 = vmatprep.subr.mxu1 %v1032_v22 }
 0x10a   : > { %1071 = vmatpush1.msra.mxu1 %v1031_v25 }
 0x10b   : > { %1072 = vmatprep.subr.mxu1 %v1030_v27 }
 0x10c   : > { %1073 = vmatpush1.msra.mxu1 %v1029_v28 }
 0x10d   : > { %1074 = vmatprep.subr.mxu1 %v1028_v15 }
 0x10e   : > { %1075 = vmatpush1.msra.mxu1 %v1027_v30 }
 0x10f   : > { %2158 = vmatmul.mubr.msk.f32.vlgmr.msra.gmra.mxu1 %vm1040_vm3, %v2630_v31  ;;  %2163 = vmatprep.subr.msk.mxu1 %vm754_vm1, %v1135_v29 }
 0x110   : > { %2164 = vmatpush1.msk.msra.mxu1 %vm754_vm1, %v2581_v61  ;;  %1204 = vmatprep.mubr.f32.mxu1 %v2310_v0  ;;  %v2650_v61 = vpop.permute.xlu0 %1037 }
 0x113   : > { %2165 = vmatmul.mubr.msk.f32.vlgmr.msra.gmra.mxu1 %vm741_vm2, %v2515_v44 }
 0x114   : > { %1210 = vmatprep.mubr.f32.mxu1 %v2310_v0 }
 0x117   : > { %2166 = vmatmul.mubr.msk.f32.gmra.mxu1 %vm741_vm2, %v2534_v48 }
 0x118   : > { %1216 = vmatprep.mubr.f32.mxu1 %v2310_v0 }
 0x11b   : > { %2167 = vmatmul.mubr.msk.f32.gmra.mxu1 %vm741_vm2, %v2550_v52 }
 0x11c   : > { %1222 = vmatprep.mubr.f32.mxu1 %v2310_v0 }
 0x11f   : > { %2168 = vmatmul.mubr.msk.f32.gmra.mxu1 %vm741_vm2, %v2566_v55 }
 0x120   : > { %1452 = vmatprep.mubr.f32.mxu1 %v2310_v0 }
 0x1cf   : > { %v1110_v32 = vpop.f32.mrf.mxu1 }
 0x1d0   : > { %v1111_v33 = vadd.f32 %v1110_v32, %v2650_v61  ;;  %v1365_v32 = vpop.permute.xlu0 %1364 }
 0x1d1   : > { %v1112_v34 = vpop.f32.mrf.mxu1 }
 0x1d2   : > { %2258 = vtanh.f32 %v1111_v33  ;;  %v1113_v35 = vadd.f32 %v1112_v34, %v2650_v61 }
 0x1d3   : > { %v1206_v38 = vpop.f32.mrf.mxu1 }
 0x1d4   : > { %2260 = vtanh.f32 %v1113_v35  ;;  %v1229_v24 = vadd.f32 %v1206_v38, %v2585_v62 }
 0x1d5   : > { %v1208_v39 = vpop.f32.mrf.mxu1 }
 0x1d6   : > { %v1230_v9 = vadd.f32 %v1208_v39, %v2587_v63 }
 0x1d7   : > { %v1212_v40 = vpop.f32.mrf.mxu1 }
 0x1d8   : > { %v1231_v16 = vadd.f32 %v1212_v40, %v2589_v1 }
 0x1d9   : > { %v1214_v41 = vpop.f32.mrf.mxu1 }
 0x1da   : > { %v1232_v11 = vadd.f32 %v1214_v41, %v2591_v2 }
 0x1db   : > { %v1218_v42 = vpop.f32.mrf.mxu1 }
 0x1dc   : > { %v1233_v60 = vadd.f32 %v1218_v42, %v2593_v3  ;;  %v1360_v42 = vpop.permute.xlu1 %1359 }
 0x1dd   : > { %v1220_v46 = vpop.f32.mrf.mxu1 }
 0x1de   : > { %v1234_v59 = vadd.f32 %v1220_v46, %v2595_v4 }
 0x1df   : > { %v2259_v36 = vpop.eup %2258  ;;  %v1224_v54 = vpop.f32.mrf.mxu1 }
 0x1e0   : > { %1117 = vst [vmem:[%s2656_s14] sm:$0x3f] %v2259_v36  ;;  %v1235_v13 = vadd.f32 %v1224_v54, %v2597_v5 }
 0x1e1   : > { %v2261_v37 = vpop.eup %2260  ;;  %v1226_v8 = vpop.f32.mrf.mxu1 }
 0x1e2   : > { %1118 = vst [vmem:[%s2656_s14 + $0x8] sm:$0x3f] %v2261_v37  ;;  %2169 = vmatprep.subr.msk.mxu0 %vm754_vm1, %v2261_v37  ;;  %v1236_v19 = vadd.f32 %v1226_v8, %v2599_v6 }
 0x1e3   : > { %2170 = vmatpush1.msk.msra.mxu0 %vm754_vm1, %v2259_v36 }
 0x1e4   : > { %2171 = vmatmul.mubr.msk.f32.vlgmr.msra.gmra.mxu0 %vm741_vm2, %v2522_v45 }
 0x1e5   : > { %1313 = vmatprep.mubr.f32.mxu0 %v2310_v0 }
 0x1e8   : > { %2172 = vmatmul.mubr.msk.f32.gmra.mxu0 %vm741_vm2, %v2540_v49 }
 0x1e9   : > { %1319 = vmatprep.mubr.f32.mxu0 %v2310_v0 }
 0x1ec   : > { %2173 = vmatmul.mubr.msk.f32.gmra.mxu0 %vm741_vm2, %v2556_v53 }
 0x1ed   : > { %1325 = vmatprep.mubr.f32.mxu0 %v2310_v0 }
 0x1f0   : > { %2174 = vmatmul.mubr.msk.f32.gmra.mxu0 %vm741_vm2, %v2572_v56 }
 0x1f1   : > { %1641 = vmatprep.mubr.f32.mxu0 %v2310_v0 }
 0x2a4   : > { %v1309_v43 = vpop.f32.mrf.mxu0 }
 0x2a5   : > { %v1332_v33 = vadd.f32 %v1309_v43, %v1229_v24  ;;  %v1355_v43 = vpop.permute.xlu0 %1354 }
 0x2a6   : > { %v1311_v47 = vpop.f32.mrf.mxu0 }
 0x2a7   : > { %v1333_v28 = vadd.f32 %v1311_v47, %v1230_v9  ;;  %v1340_v46 = vadd.f32 %v1332_v33, %v2617_v50 }
 0x2a8   : > { %v1315_v51 = vpop.f32.mrf.mxu0 }
 0x2a9   : > { %v1334_v25 = vadd.f32 %v1315_v51, %v1231_v16  ;;  %v1341_v38 = vadd.f32 %v1333_v28, %v2617_v50  ;;  %v1372_v8 = vadd.f32 %v1355_v43, %v1340_v46  ;;  %v1469_v16 = vcombine.high %v2462_v7, %v2462_v7 }
 0x2aa   : > { %v1317_v57 = vpop.f32.mrf.mxu0 }
 0x2ab   : > { %v1335_v21 = vadd.f32 %v1317_v57, %v1232_v11  ;;  %v1342_v37 = vadd.f32 %v1334_v25, %v2608_v26 }
 0x2ac   : > { %v1321_v58 = vpop.f32.mrf.mxu0 }
 0x2ad   : > { %v1336_v17 = vadd.f32 %v1321_v58, %v1233_v60  ;;  %v1343_v35 = vadd.f32 %v1335_v21, %v2608_v26  ;;  %v1374_v57 = vadd.f32 %v1360_v42, %v1342_v37  ;;  %v1373_v60 = vadd.f32 %v1355_v43, %v1341_v38 }
 0x2ae   : > { %v1323_v10 = vpop.f32.mrf.mxu0 }
 0x2af   : > { %v1337_v14 = vadd.f32 %v1323_v10, %v1234_v59  ;;  %v1344_v34 = vadd.f32 %v1336_v17, %v2603_v20  ;;  %v1375_v54 = vadd.f32 %v1360_v42, %v1343_v35  ;;  %v1380_v17 = vmax.f32 %v1372_v8, 0.0 }
 0x2b0   : > { %v1327_v18 = vpop.f32.mrf.mxu0 }
 0x2b1   : > { %v1338_v22 = vadd.f32 %v1327_v18, %v1235_v13  ;;  %v1345_v15 = vadd.f32 %v1337_v14, %v2603_v20  ;;  %v1376_v47 = vadd.f32 %v1365_v32, %v1344_v34  ;;  %v1383_v11 = vmax.f32 %v1375_v54, 0.0 }
 0x2b2   : > { %v1329_v27 = vpop.f32.mrf.mxu0  ;;  %v1382_v13 = vmax.f32 %v1374_v57, 0.0  ;;  %v1381_v14 = vmax.f32 %v1373_v60, 0.0 }
 0x2b3   : > { %v1346_v29 = vadd.f32 %v1338_v22, %v2601_v12  ;;  %v1339_v30 = vadd.f32 %v1329_v27, %v1236_v19  ;;  %v1377_v41 = vadd.f32 %v1365_v32, %v1345_v15  ;;  %v1384_v10 = vmax.f32 %v1376_v47, 0.0 }
 0x2b5   : > { %v1347_v36 = vadd.f32 %v1339_v30, %v2601_v12  ;;  %v1378_v39 = vadd.f32 %v1370_v23, %v1346_v29  ;;  %v1385_v59 = vmax.f32 %v1377_v41, 0.0 }
 0x2b7   : > { %v1379_v40 = vadd.f32 %v1370_v23, %v1347_v36  ;;  %v1386_v58 = vmax.f32 %v1378_v39, 0.0 }
 0x2b9   : > { %v1387_v51 = vmax.f32 %v1379_v40, 0.0 }
 0x2bb   : > { %1412 = vmatprep.subr.mxu1 %v1387_v51 }
 0x2bc   : > { %1413 = vmatpush1.msra.mxu1 %v1386_v58 }
 0x2bd   : > { %1414 = vmatprep.subr.mxu1 %v1385_v59 }
 0x2be   : > { %1415 = vmatpush1.msra.mxu1 %v1384_v10 }
 0x2bf   : > { %1416 = vmatprep.subr.mxu1 %v1383_v11 }
 0x2c0   : > { %1417 = vmatpush1.msra.mxu1 %v1382_v13 }
 0x2c1   : > { %1418 = vmatprep.subr.mxu1 %v1381_v14 }
 0x2c2   : > { %1419 = vmatpush1.msra.mxu1 %v1380_v17 }
 0x2c3   : > { %2175 = vmatmul.mubr.msk.f32.vlgmr.msra.gmra.mxu1 %vm1040_vm3, %v2630_v31  ;;  %2180 = vmatprep.subr.msk.mxu1 %vm754_vm1, %v1469_v16 }
 0x2c4   : > { %2181 = vmatpush1.msk.msra.mxu1 %vm754_vm1, %v2462_v7  ;;  %1538 = vmatprep.mubr.f32.mxu1 %v2310_v0 }
 0x2c7   : > { %2182 = vmatmul.mubr.msk.f32.vlgmr.msra.gmra.mxu1 %vm741_vm2, %v2515_v44 }
 0x2c8   : > { %1544 = vmatprep.mubr.f32.mxu1 %v2310_v0 }
 0x2cb   : > { %2183 = vmatmul.mubr.msk.f32.gmra.mxu1 %vm741_vm2, %v2534_v48 }
 0x2cc   : > { %1550 = vmatprep.mubr.f32.mxu1 %v2310_v0 }
 0x2cf   : > { %2184 = vmatmul.mubr.msk.f32.gmra.mxu1 %vm741_vm2, %v2550_v52 }
 0x2d0   : > { %1556 = vmatprep.mubr.f32.mxu1 %v2310_v0 }
 0x2d3   : > { %2185 = vmatmul.mubr.msk.f32.gmra.mxu1 %vm741_vm2, %v2566_v55 }
 0x2d4   : > { %1786 = vmatprep.mubr.f32.mxu1 %v2310_v0 }
 0x383   : > { %v1454_v7 = vpop.f32.mrf.mxu1 }
 0x384   : > { %v1455_v44 = vadd.f32 %v1454_v7, %v2650_v61 }
 0x385   : > { %v1456_v18 = vpop.f32.mrf.mxu1 }
 0x386   : > { %2262 = vtanh.f32 %v1455_v44  ;;  %v1457_v9 = vadd.f32 %v1456_v18, %v2650_v61 }
 0x387   : > { %v1540_v52 = vpop.f32.mrf.mxu1 }
 0x388   : > { %2264 = vtanh.f32 %v1457_v9 }
 0x389   : > { %v1542_v55 = vpop.f32.mrf.mxu1 }
 0x38a   : > { %v1564_v37 = vadd.f32 %v1542_v55, %v2587_v63 }
 0x38b   : > { %v1546_v21 = vpop.f32.mrf.mxu1 }
 0x38c   : > { %v1565_v34 = vadd.f32 %v1546_v21, %v2589_v1  ;;  %v1699_v1 = vpop.permute.xlu0 %1698 }
 0x38d   : > { %v1548_v22 = vpop.f32.mrf.mxu1 }
 0x390   : > { %v1689_v14 = vpop.permute.xlu0 %1688 }
 0x393   : > { %v2263_v48 = vpop.eup %2262 }
 0x394   : > { %2176 = vst [vmem:[%s2656_s14 + $0x10] sm:$0x3f] %v2263_v48 }
 0x395   : > { %v2265_v19 = vpop.eup %2264 }
 0x396   : > { %2177 = vst [vmem:[%s2656_s14 + $0x18] sm:$0x3f] %v2265_v19  ;;  %2186 = vmatprep.subr.msk.mxu0 %vm754_vm1, %v2265_v19 }
 0x397   : > { %2187 = vmatpush1.msk.msra.mxu0 %vm754_vm1, %v2263_v48 }
 0x398   : > { %2188 = vmatmul.mubr.msk.f32.vlgmr.msra.gmra.mxu0 %vm741_vm2, %v2522_v45  ;;  %v1552_v45 = vpop.f32.mrf.mxu1 }
 0x399   : > { %1647 = vmatprep.mubr.f32.mxu0 %v2310_v0 }
 0x39a   : > { %v1554_v24 = vpop.f32.mrf.mxu1 }
 0x39b   : > { %v1568_v29 = vadd.f32 %v1554_v24, %v2595_v4  ;;  %v1704_v4 = vpop.permute.xlu1 %1703 }
 0x39c   : > { %2189 = vmatmul.mubr.msk.f32.gmra.mxu0 %vm741_vm2, %v2540_v49  ;;  %v1558_v49 = vpop.f32.mrf.mxu1 }
 0x39d   : > { %1653 = vmatprep.mubr.f32.mxu0 %v2310_v0  ;;  %v1569_v32 = vadd.f32 %v1558_v49, %v2597_v5 }
 0x39f   : > { %v1694_v60 = vpop.permute.xlu1 %1693 }
 0x3a0   : > { %2190 = vmatmul.mubr.msk.f32.gmra.mxu0 %vm741_vm2, %v2556_v53  ;;  %v1567_v53 = vadd.f32 %v1552_v45, %v2593_v3  ;;  %v1563_v3 = vadd.f32 %v1540_v52, %v2585_v62  ;;  %v1852_v45 = vld [vmem:[%s2464_s29 + $0x8] sm:$0xff] (%p2414_p3) }
 0x3a1   : > { %1659 = vmatprep.mubr.f32.mxu0 %v2310_v0  ;;  %v1560_v0 = vpop.f32.mrf.mxu1  ;;  %1853 = vst [vmem:[%s1817_s22 + $0x10] sm:$0xff] (%p2414_p3), %v1852_v45 }
 0x3a2   : > { %v1570_v39 = vadd.f32 %v1560_v0, %v2599_v6 }
 0x3a4   : > { %2191 = vmatmul.mubr.msk.f32.gmra.mxu0 %vm741_vm2, %v2572_v56  ;;  %v1566_v56 = vadd.f32 %v1548_v22, %v2591_v2 }
 0x458   : > { %v1643_v23 = vpop.f32.mrf.mxu0 }
 0x459   : > { %v1666_v51 = vadd.f32 %v1643_v23, %v1563_v3  ;;  %v1854_v23 = vld [vmem:[%s2464_s29 + $0x10] sm:$0xff] (%p2414_p3) }
 0x45a   : > { %v1645_v25 = vpop.f32.mrf.mxu0  ;;  %1855 = vst [vmem:[%s1817_s22 + $0x20] sm:$0xff] (%p2414_p3), %v1854_v23 }
 0x45b   : > { %v1667_v46 = vadd.f32 %v1645_v25, %v1564_v37  ;;  %v1674_v8 = vadd.f32 %v1666_v51, %v2617_v50 }
 0x45c   : > { %v1649_v27 = vpop.f32.mrf.mxu0 }
 0x45d   : > { %v1668_v41 = vadd.f32 %v1649_v27, %v1565_v34  ;;  %v1675_v62 = vadd.f32 %v1667_v46, %v2617_v50 }
 0x45e   : > { %v1651_v28 = vpop.f32.mrf.mxu0 }
 0x45f   : > { %v1669_v38 = vadd.f32 %v1651_v28, %v1566_v56  ;;  %v1676_v43 = vadd.f32 %v1668_v41, %v2608_v26  ;;  %v1707_v7 = vadd.f32 %v1689_v14, %v1675_v62 }
 0x460   : > { %v1655_v15 = vpop.f32.mrf.mxu0 }
 0x461   : > { %v1670_v35 = vadd.f32 %v1655_v15, %v1567_v53  ;;  %v1677_v63 = vadd.f32 %v1669_v38, %v2608_v26  ;;  %v1708_v16 = vadd.f32 %v1694_v60, %v1676_v43  ;;  %v1715_v50 = vmax.f32 %v1707_v7, 0.0 }
 0x462   : > { %v1657_v30 = vpop.f32.mrf.mxu0 }
 0x463   : > { %v1671_v33 = vadd.f32 %v1657_v30, %v1568_v29  ;;  %v1678_v54 = vadd.f32 %v1670_v35, %v2603_v20  ;;  %v1709_v13 = vadd.f32 %v1694_v60, %v1677_v63  ;;  %v1716_v18 = vmax.f32 %v1708_v16, 0.0 }
 0x464   : > { %v1661_v36 = vpop.f32.mrf.mxu0 }
 0x465   : > { %v1672_v40 = vadd.f32 %v1661_v36, %v1569_v32  ;;  %v1679_v2 = vadd.f32 %v1671_v33, %v2603_v20  ;;  %v1710_v10 = vadd.f32 %v1699_v1, %v1678_v54  ;;  %v1717_v26 = vmax.f32 %v1709_v13, 0.0 }
 0x466   : > { %v1663_v42 = vpop.f32.mrf.mxu0 }
 0x467   : > { %v1680_v5 = vadd.f32 %v1672_v40, %v2601_v12  ;;  %v1673_v47 = vadd.f32 %v1663_v42, %v1570_v39  ;;  %v1711_v59 = vadd.f32 %v1699_v1, %v1679_v2  ;;  %v1718_v44 = vmax.f32 %v1710_v10, 0.0 }
 0x469   : > { %v1681_v6 = vadd.f32 %v1673_v47, %v2601_v12  ;;  %v1712_v57 = vadd.f32 %v1704_v4, %v1680_v5  ;;  %v1719_v17 = vmax.f32 %v1711_v59, 0.0  ;;  %v1706_v12 = vadd.f32 %v1689_v14, %v1674_v8 }
 0x46b   : > { %v1713_v58 = vadd.f32 %v1704_v4, %v1681_v6  ;;  %v1720_v20 = vmax.f32 %v1712_v57, 0.0  ;;  %v1714_v9 = vmax.f32 %v1706_v12, 0.0 }
 0x46d   : > { %v1721_v11 = vmax.f32 %v1713_v58, 0.0 }
 0x46f   : > { %1746 = vmatprep.subr.mxu1 %v1721_v11 }
 0x470   : > { %1747 = vmatpush1.msra.mxu1 %v1720_v20 }
 0x471   : > { %1748 = vmatprep.subr.mxu1 %v1719_v17 }
 0x472   : > { %1749 = vmatpush1.msra.mxu1 %v1718_v44 }
 0x473   : > { %1750 = vmatprep.subr.mxu1 %v1717_v26 }
 0x474   : > { %1751 = vmatpush1.msra.mxu1 %v1716_v18 }
 0x475   : > { %1752 = vmatprep.subr.mxu1 %v1715_v50 }
 0x476   : > { %1753 = vmatpush1.msra.mxu1 %v1714_v9 }
 0x477   : > { %2192 = vmatmul.mubr.msk.f32.vlgmr.msra.gmra.mxu1 %vm1040_vm3, %v2630_v31  ;;  %v1850_v31 = vld [vmem:[%s2464_s29] sm:$0xff] (%p2414_p3) }
 0x478   : > { %1851 = vst [vmem:[%s1817_s22] sm:$0xff] (%p2414_p3), %v1850_v31 }
 0x537   : > { %v1788_v48 = vpop.f32.mrf.mxu1 }
 0x538   : > { %v1789_v19 = vadd.f32 %v1788_v48, %v2650_v61 }
 0x539   : > { %v1790_v52 = vpop.f32.mrf.mxu1 }
 0x53a   : > { %2266 = vtanh.f32 %v1789_v19  ;;  %v1791_v55 = vadd.f32 %v1790_v52, %v2650_v61 }
 0x53c   : > { %2268 = vtanh.f32 %v1791_v55 }
 0x546   : > { %1812 = sbr.rel (!%p2414_p3) target bundleno = 1355 (0x54b), region = 68 }
 0x547   : > { %v2267_v21 = vpop.eup %2266 }
 0x548   : > { %2193 = vst [vmem:[%s2656_s14 + $0x20] sm:$0x3f] %v2267_v21 }
 0x549   : > { %v2269_v22 = vpop.eup %2268 }
 0x54a   : > { %2194 = vst [vmem:[%s2656_s14 + $0x28] sm:$0x3f] %v2269_v22 }
 0x54b PF: > { %1861 = sbr.rel (!%p2414_p3) target bundleno = 1365 (0x555), region = 106  ;;  %s2827_s24 = sld [smem:[#allocation6_spill]] (%p2414_p3)  ;;  %v1899_v61 = vld [vmem:[%s2468_s12] sm:$0xff] (%p2414_p3)  ;;  %v1901_v24 = vld [vmem:[%s2468_s12 + $0x8] sm:$0xff] (%p2414_p3)  ;;  %v1903_v25 = vld [vmem:[%s2468_s12 + $0x10] sm:$0xff] (%p2414_p3) }
 0x54c   : > { %s2828_s17 = sld [smem:[#allocation12_spill]] (%p2414_p3) }
 0x551   : > { %s2208_s30 = sshll.u32 %s2827_s24, 3 }
 0x552   : > { %s1866_s23 = scalar_lea.vmem %s2828_s17, %s2208_s30 }
 0x553   : > { %1900 = vst [vmem:[%s1866_s23] sm:$0xff] %v1899_v61  ;;  %1902 = vst [vmem:[%s1866_s23 + $0x10] sm:$0xff] %v1901_v24 }
 0x554   : > { %1904 = vst [vmem:[%s1866_s23 + $0x20] sm:$0xff] %v1903_v25 }
 0x555 PF: > { %1910 = sbr.rel (!%p2414_p3) target bundleno = 1376 (0x560), region = 144  ;;  %s2829_s28 = sld [smem:[#allocation6_spill]] (%p2414_p3)  ;;  %v1928_v27 = vld [vmem:[%s2656_s14] sm:$0xff] (%p2414_p3)  ;;  %v1930_v49 = vld [vmem:[%s2656_s14 + $0x8] sm:$0xff] (%p2414_p3)  ;;  %v1932_v28 = vld [vmem:[%s2656_s14 + $0x10] sm:$0xff] (%p2414_p3) }
 0x556   : > { %s2830_s26 = sld [smem:[#allocation13_spill]] (%p2414_p3)  ;;  %v1934_v15 = vld [vmem:[%s2656_s14 + $0x18] sm:$0xff] (%p2414_p3)  ;;  %v1936_v29 = vld [vmem:[%s2656_s14 + $0x20] sm:$0xff] (%p2414_p3)  ;;  %v1938_v53 = vld [vmem:[%s2656_s14 + $0x28] sm:$0xff] (%p2414_p3) }
 0x55b   : > { %s2209_s11 = sshll.u32 %s2829_s28, 4 }
 0x55c   : > { %s1915_s27 = scalar_lea.vmem %s2830_s26, %s2209_s11 }
 0x55d   : > { %1929 = vst [vmem:[%s1915_s27] sm:$0xff] %v1928_v27  ;;  %1931 = vst [vmem:[%s1915_s27 + $0x8] sm:$0xff] %v1930_v49 }
 0x55e   : > { %1933 = vst [vmem:[%s1915_s27 + $0x20] sm:$0xff] %v1932_v28  ;;  %1935 = vst [vmem:[%s1915_s27 + $0x28] sm:$0xff] %v1934_v15 }
 0x55f   : > { %1937 = vst [vmem:[%s1915_s27 + $0x40] sm:$0xff] %v1936_v29  ;;  %1939 = vst [vmem:[%s1915_s27 + $0x48] sm:$0xff] %v1938_v53 }
 0x560 PF: > { %s2831_s16 = sld [smem:[#allocation8_spill]] }
 0x561   : > { %s2832_s25 = sld [smem:[#allocation5_spill]] }
 0x562   : > { %s2833_s26 = sld [smem:[#allocation10_spill]] }
 0x563   : > { %s2834_s27 = sld [smem:[#allocation7_spill]] }
 0x564   : > { %s2835_s28 = sld [smem:[#allocation9_spill]] }
 0x566   : > { %s24_s29 = sadd.s32 1, %s2831_s16  }
 0x567   : > { %p21_p9 = scmp.ge.s32.totalorder %s24_s29, 4  }
 0x569   :  { %23 = sbr.rel (!%p21_p9) target bundleno = 7 (0x7), region = 232 }

</bundles_post_ra>
